<compile_context>
chip_gen: v7x
topology: tpu7x:2x2x1
jax: 0.10.0
libtpu: 0.0.40
codegen_flags: <defaults>
</compile_context>

<pallas_src>
import numpy as np
import jax
import jax.numpy as jnp
from jax.experimental import pallas as pl
from jax.experimental.pallas import tpu as pltpu


_TARGET_TILE_BYTES = 4 << 20      # ~4 MiB per buffer
_VMEM_LIMIT_BYTES = 32 << 20      # 4 double-buffers x 4 MiB + headroom; safe on all chips
_MIN_GRID_STEPS = 4               # give v7x megacore something to shard


def _copy_kernel(x_ref, o_ref):
    # identity copy of the current tile (pure data movement, no compute)
    o_ref[...] = x_ref[...]


def _min_sublanes(itemsize):
    # 32-bit -> 8, 16-bit -> 16, 8-bit -> 32 (sub-32-bit dtypes pack along sublanes)
    return max(8, 32 // max(1, itemsize))


def _choose_cols(total):
    """Largest lane-dense width (multiple of 128) dividing the flat size."""
    for c in (4096, 2048, 1024, 512, 256, 128):
        if total % c == 0:
            return c
    return None


def _choose_block_rows(rows, cols, itemsize):
    """Row block: dtype-aware sublane multiple, ~4 MiB/buffer, >= _MIN_GRID_STEPS steps."""
    min_sub = _min_sublanes(itemsize)
    by_bytes = max(min_sub, _TARGET_TILE_BYTES // (cols * itemsize))
    by_steps = max(min_sub, -(-rows // _MIN_GRID_STEPS))   # ceil(rows / steps)
    block_rows = min(by_bytes, by_steps)
    block_rows = max(min_sub, (block_rows // min_sub) * min_sub)
    if block_rows >= rows:
        return rows            # single full-extent block (always a legal block shape)
    return block_rows


def _pallas_copy_2d(x2d, block_rows):
    """Element-order-preserving streaming copy of a 2D array, tiled over rows."""
    rows, cols = x2d.shape
    nbytes = int(x2d.size) * jnp.dtype(x2d.dtype).itemsize
    return pl.pallas_call(
        _copy_kernel,
        out_shape=jax.ShapeDtypeStruct((rows, cols), x2d.dtype),
        grid=(pl.cdiv(rows, block_rows),),          # partial trailing block is masked
        in_specs=[pl.BlockSpec((block_rows, cols), lambda i: (i, 0))],
        out_specs=pl.BlockSpec((block_rows, cols), lambda i: (i, 0)),
        compiler_params=pltpu.CompilerParams(
            dimension_semantics=("parallel",),
            vmem_limit_bytes=_VMEM_LIMIT_BYTES),
        cost_estimate=pl.CostEstimate(
            flops=0, transcendentals=0, bytes_accessed=2 * nbytes),
    )(x2d)


class Reshape:
    """JAX/Pallas equivalent of the PyTorch Reshape module."""

    def __init__(self, shape):
        self.shape = tuple(int(s) for s in shape)

    def __call__(self, x):
        total = int(np.prod(x.shape))
        tail = int(np.prod(self.shape)) if self.shape else 1
        assert total % tail == 0, "input size not divisible by target shape"
        lead = total // tail
        out_shape = (lead, *self.shape)
        itemsize = jnp.dtype(x.dtype).itemsize

        cols = _choose_cols(total)
        if cols is not None:
            # Hot path: lane-dense 2D view whose last dim is a big multiple of 128.
            rows = total // cols
        else:
            # Flat size has no multiple-of-128 factor: tile the natural
            # (lead, tail) output view over its leading dim.  The block's last
            # dim equals the full array extent (legal for any tail), so this
            # still pipelines and never needs the whole array in VMEM; stores
            # may be lane-masked (slower) when tail % 128 != 0.
            # TODO(synk): if tail alone exceeds the VMEM budget and total has
            # no 128-multiple factor, split into a prefix kernel + tail copy.
            rows, cols = lead, tail

        x2d = x.reshape(rows, cols)                       # metadata-only view
        block_rows = _choose_block_rows(rows, cols, itemsize)
        out2d = _pallas_copy_2d(x2d, block_rows)          # streaming copy
        return out2d.reshape(out_shape)                   # metadata-only


if __name__ == "__main__":
    key = jax.random.PRNGKey(0)

    # 1) Primary test: PyTorch-style NCHW input, small shape (single block).
    x = jax.random.normal(key, (2, 4, 16, 16), dtype=jnp.float32)
    mod = Reshape((8, 32))                                # reshape to (-1, 8, 32)
    y = jax.block_until_ready(mod(x))
    assert y.shape == (8, 8, 32), y.shape
    np.testing.assert_array_equal(np.asarray(y), np.asarray(x.reshape(-1, 8, 32)))

    # 2) Multi-step grid with a partial trailing block (rows=72, block_rows=16, grid=5).
    x2 = jax.random.normal(jax.random.PRNGKey(0), (9, 8, 64, 64), dtype=jnp.float32)
    mod2 = Reshape((64, 64))
    y2 = jax.block_until_ready(mod2(x2))
    assert y2.shape == (72, 64, 64), y2.shape
    np.testing.assert_array_equal(np.asarray(y2), np.asarray(x2.reshape(-1, 64, 64)))

    # 3) bf16: dtype-aware sublane floor (block_rows multiple of 16), grid=4.
    x3 = jax.random.normal(jax.random.PRNGKey(0), (16, 8, 64, 64), dtype=jnp.bfloat16)
    mod3 = Reshape((64, 64))
    y3 = jax.block_until_ready(mod3(x3))
    assert y3.shape == (128, 64, 64), y3.shape
    np.testing.assert_array_equal(np.asarray(y3), np.asarray(x3.reshape(-1, 64, 64)))

    # 4) Ragged flat size (no multiple-of-128 factor): (lead, tail) fallback path.
    x4 = jax.random.normal(jax.random.PRNGKey(0), (2, 3, 5, 7), dtype=jnp.float32)
    mod4 = Reshape((5, 7))
    y4 = jax.block_until_ready(mod4(x4))
    assert y4.shape == (6, 5, 7), y4.shape
    np.testing.assert_array_equal(np.asarray(y4), np.asarray(x4.reshape(-1, 5, 7)))

    print("KERNEL_OK")
</pallas_src>

<mosaic_0001>
module attributes {stable_mosaic.version = 11 : i64} {
  func.func @_copy_kernel(%arg0: i32, %arg1: memref<1x2048xf32, #tpu.memory_space<vmem>>, %arg2: memref<1x2048xf32, #tpu.memory_space<vmem>>) attributes {dimension_semantics = [#tpu.dimension_semantics<parallel>], iteration_bounds = array<i64: 1>, scalar_prefetch = 0 : i64, scratch_operands = 0 : i64, tpu.core_type = #tpu.core_type<tc>, window_params = [{transform_indices = @transform_0, window_bounds = array<i64: 1, 2048>}, {transform_indices = @transform_1, window_bounds = array<i64: 1, 2048>}]} {
    %c0 = arith.constant 0 : index
    %c0_0 = arith.constant 0 : index
    %0 = vector.load %arg1[%c0, %c0_0] : memref<1x2048xf32, #tpu.memory_space<vmem>>, vector<1x2048xf32>
    %c0_1 = arith.constant 0 : index
    %c0_2 = arith.constant 0 : index
    %1 = vector.load %arg2[%c0_1, %c0_2] : memref<1x2048xf32, #tpu.memory_space<vmem>>, vector<1x2048xf32>
    tpu.vector_store %arg2[%c0_1, %c0_2], %0 {strides = array<i32>} : memref<1x2048xf32, #tpu.memory_space<vmem>>, vector<1x2048xf32>,
    return
  }
  func.func @transform_0(%arg0: i32) -> (i32, i32) {
    %c0_i32 = arith.constant 0 : i32
    %c0_i32_0 = arith.constant 0 : i32
    return %arg0, %c0_i32 : i32, i32
  }
  func.func @transform_1(%arg0: i32) -> (i32, i32) {
    %c0_i32 = arith.constant 0 : i32
    %c0_i32_0 = arith.constant 0 : i32
    return %arg0, %c0_i32 : i32, i32
  }
}

</mosaic_0001>

<bundles_post_ra>
// kernel: tpu_custom_call.1
= control target key start
LH: loop header
LB: loop body
LE: loop exit
PB: predicated region body
PF: predicated region fallthrough
CT: control target
= control target key end

     0   :  { %6 = vsyncpa [#allocation3], 0  ;;  %s126_s0 = inlined_call_operand.hbm [shape: f32[1,2048], index: 0, kind: input, shape index: {}]   ;;  %s127_s1 = inlined_call_operand.hbm [shape: f32[1,2048], index: 1, kind: output, shape index: {}]  }
   0x1   :  { %7 = vsyncpa [#allocation4], 0  ;;  %s90_s6 = smov [#allocation2]   ;;  %s42_s10 = scalar_lea.hbm %s126_s0, 256 }
   0x2   :  { %s14_s7 = sshll.u32 %s90_s6, 4  ;;  %p43_p0 = scmp.ne.s32.totalorder %s126_s0, %s42_s10  ;;  %s15_s7 = int_to_ptr.vmem [resolvable:$true] %s14_s7 }
   0x3   :  { %p46_p1 = scmp.lt.u32.totalorder %s42_s10, %s126_s0 }
   0x5   :  { %p48_p2 = pnand %p46_p1, %p43_p0 }
   0x7   :  { %51 = shalt.err (!%p48_p2)
}
   0x8   :  { %s52_s15 = scalar_lea.vmem %s15_s7, 256  ;;  %p57_p4 = scmp.lt.s32.totalorder %s15_s7, %s15_s7 }
   0x9   :  { %p53_p3 = scmp.ne.s32.totalorder %s15_s7, %s52_s15  ;;  %p58_p5 = scmp.lt.s32.totalorder %s52_s15, %s52_s15 }
   0xb   :  { %p59_p6 = por %p58_p5, %p57_p4 }
   0xd   :  { %p60_p7 = pnand %p59_p6, %p53_p3 }
   0xf   :  { %63 = shalt.err (!%p60_p7)
}
  0x10   :  { %17 = dma.hbm_to_vmem [thread:$0]  %s126_s0, 256, %s15_s7, [#allocation3]  }
  0x11   :  { %86 = dma.done.wait [#allocation3], 256  }
  0x12   :  { %87 = vsyncadd [#allocation3], 4294967040  ;;  %s91_s18 = smov [#allocation5]   ;;  %v21_v0 = vld [vmem:[#allocation2] sm:$0xff]  ;;  %v22_v1 = vld [vmem:[#allocation2 + $0x8] sm:$0xff] }
  0x13   :  { %s31_s19 = sshll.u32 %s91_s18, 4  ;;  %23 = vst [vmem:[#allocation5] sm:$0xff] %v21_v0  ;;  %24 = vst [vmem:[#allocation5 + $0x8] sm:$0xff] %v22_v1  ;;  %s32_s19 = int_to_ptr.vmem [resolvable:$true] %s31_s19 }
  0x14   :  { %s64_s20 = scalar_lea.vmem %s32_s19, 256  ;;  %p69_p9 = scmp.lt.s32.totalorder %s32_s19, %s32_s19 }
  0x15   :  { %p65_p8 = scmp.ne.s32.totalorder %s32_s19, %s64_s20  ;;  %p70_p10 = scmp.lt.s32.totalorder %s64_s20, %s64_s20 }
  0x17   :  { %p71_p11 = por %p70_p10, %p69_p9 }
  0x19   :  { %p72_p12 = pnand %p71_p11, %p65_p8 }
  0x1b   :  { %75 = shalt.err (!%p72_p12)
}
  0x1c   :  { %s76_s0 = scalar_lea.hbm %s127_s1, 256 }
  0x1d   :  { %p77_p13 = scmp.ne.s32.totalorder %s127_s1, %s76_s0  ;;  %p80_p0 = scmp.lt.u32.totalorder %s76_s0, %s127_s1 }
  0x1f   :  { %p82_p1 = pnand %p80_p0, %p77_p13 }
  0x21   :  { %85 = shalt.err (!%p82_p1)
}
  0x22   :  { %34 = dma.vmem_to_hbm [thread:$0]  %s32_s19, 256, %s127_s1, [#allocation4]  }
  0x23   :  { %88 = dma.done.wait [#allocation4], 256  }
  0x24   :  { %89 = vsyncadd [#allocation4], 4294967040 }
  0x25   :  { %38 = vsyncpa [#allocation3], 1 }
  0x26   :  { %39 = vsyncpa [#allocation4], 1 }

</bundles_post_ra>
